<compile_context>
chip_gen: v5e
topology: v5e:2x2
jax: 0.10.0
libtpu: 0.0.40
codegen_flags: <defaults>
</compile_context>

<pallas_src>
import numpy as np
import jax
import jax.numpy as jnp
from jax.experimental import pallas as pl
from jax.experimental.pallas import tpu as pltpu

# ------------- synthetic config (stand-in for the env-var read_base_config) -------------
FEAT_DIM = 16
LEFT_CONTEXT = 3
RIGHT_CONTEXT = 4
TIME_DIM = LEFT_CONTEXT + RIGHT_CONTEXT + 1        # 8
CHANNEL_SIZES = [4, 8]
KERNEL_SIZES = [3, 3]
DOWNSAMPLE_SIZES = [2, 0]
LATENT_DIM = 32
USE_BATCH_NORM = True
BATCH = 4
BN_EPS = 1e-5

# ------------- shapes derived exactly as in Decoder.__init__ -------------
def _encoder_dims():
    c, h, w = 1, TIME_DIM, FEAT_DIM
    for cs, ks, ds in zip(CHANNEL_SIZES, KERNEL_SIZES, DOWNSAMPLE_SIZES):
        c, h, w = cs, h - ks + 1, w - ks + 1
        if ds > 0:
            w = (w - ds) // ds + 1
    return c, h, w

ENC_C, ENC_H, ENC_W = _encoder_dims()              # (8, 4, 5): decoder input after view()
LAT_OUT = ENC_C * ENC_H * ENC_W                    # 160

# decoder layer idx=1: ReLU -> Conv2d(8->4, k, pad=k-1) -> BatchNorm2d(4)
K1 = KERNEL_SIZES[1]
C1 = CHANNEL_SIZES[0]                              # 4
H1 = ENC_H + K1 - 1                                # 6
W1 = ENC_W + K1 - 1                                # 7
F1 = C1 * H1 * W1                                  # 168

# decoder layer idx=0: ReLU -> MaxUnpool2d((1, ds)) -> Conv2d(4->1, k, pad=k-1)
K0 = KERNEL_SIZES[0]
DS0 = DOWNSAMPLE_SIZES[0]                          # 2
W1U = W1 * DS0                                     # 14 (== encoder pre-pool width here)
F1U = C1 * H1 * W1U                                # 336
OUT_C = 1
OUT_H = H1 + K0 - 1                                # 8
OUT_W = W1U + K0 - 1                               # 16
F_OUT = OUT_C * OUT_H * OUT_W                      # 128 (lane-dense output)

# pooling indices are < H1*W1U = 84 < 256 -> exact in bf16 for the expansion matmul
assert H1 * W1U <= 256


# ---------------------------------- the kernel ----------------------------------
def _decoder_kernel(latent_ref, idx_ref, wlat_ref, m1_ref, g_ref, e_ref, m0_ref,
                    slab_ref, out_ref):
    f32, bf16 = jnp.float32, jnp.bfloat16

    # packed small parameters (single slab -> single DMA)
    slab = slab_ref[...]
    b_lat   = slab[0:1, 0:LAT_OUT]     # (1,160) latent Linear bias
    gamma_f = slab[1:2, 0:F1]          # (1,168) BN gamma broadcast over each channel block
    beta_f  = slab[2:3, 0:F1]          # (1,168) BN beta  broadcast over each channel block
    bias0_f = slab[3:4, 0:F_OUT]       # (1,128) final conv bias broadcast over (oh, ow)
    t_flat  = slab[4:5, 0:F1U]         # (1,336) flat spatial index of each unpooled lane

    # ---- latent head: ReLU -> Linear(latent_dim -> C*H*W) ----
    # (.view(-1, C, H, W) is a no-op here: we keep PyTorch's row-major (c,h,w)
    #  flat feature order on the lane axis throughout.)
    x = jnp.maximum(latent_ref[...], 0.0)
    x = jnp.dot(x.astype(bf16), wlat_ref[...], preferred_element_type=f32) + b_lat   # (B,160)

    # ---- decoder idx=1: ReLU -> Conv2d(8->4, k3, pad2) -> BatchNorm2d(4) ----
    x = jnp.maximum(x, 0.0)
    y = jnp.dot(x.astype(bf16), m1_ref[...], preferred_element_type=f32)             # (B,168)
    # conv2d_1 bias dropped: exactly cancelled by the BN mean subtraction below.

    # training-mode BatchNorm2d: per-channel biased stats over (B,H,W);
    # one-pass sum / sum-of-squares, reduce+broadcast via 0/1 channel matrix G,
    # folded into a single per-lane scale/shift.
    col_sum = jnp.sum(y, axis=0, keepdims=True)                                      # (1,168)
    col_sq  = jnp.sum(y * y, axis=0, keepdims=True)                                  # (1,168)
    sum_b = jnp.dot(col_sum, g_ref[...], preferred_element_type=f32)                 # per-channel sums,
    sq_b  = jnp.dot(col_sq,  g_ref[...], preferred_element_type=f32)                 # broadcast on lanes
    inv_n = 1.0 / float(y.shape[0] * H1 * W1)
    mean_f = sum_b * inv_n
    var_f  = sq_b * inv_n - mean_f * mean_f
    scale_f = gamma_f * jax.lax.rsqrt(var_f + BN_EPS)   # rsqrt -> EUP (free slot)
    shift_f = beta_f - mean_f * scale_f
    y = y * scale_f + shift_f

    # ---- decoder idx=0: ReLU -> MaxUnpool2d((1,2)) -> Conv2d(4->1, k3, pad2) ----
    y = jnp.maximum(y, 0.0)
    e = e_ref[...]
    y_up   = jnp.dot(y.astype(bf16), e, preferred_element_type=f32)                  # (B,336) repeat x ds
    idx_up = jnp.dot(idx_ref[...].astype(bf16), e, preferred_element_type=f32)       # exact (ids < 256)
    z = jnp.where(jnp.abs(idx_up - t_flat) < 0.5, y_up, 0.0)                         # unpool scatter
    out = jnp.dot(z.astype(bf16), m0_ref[...], preferred_element_type=f32) + bias0_f  # (B,128)

    out_ref[...] = out.astype(out_ref.dtype)


# ---------------------------------- wrapper ----------------------------------
def decoder_forward(latent, unpool_sizes, pooling_indices, kernel_ops):
    """Mirrors Decoder.forward(latent, unpool_sizes, pooling_indices).

    The single MaxUnpool2d layer consumes the last element of each list.
    The unpool output_size is compile-time static in this implementation; the
    runtime value is validated against the prepared operators.
    """
    batch = latent.shape[0]
    assert tuple(unpool_sizes[-1][-3:]) == (C1, H1, W1U)
    idx_flat = pooling_indices[-1].reshape(batch, -1).astype(jnp.float32)   # (B, 168)

    vmem = pl.BlockSpec(memory_space=pltpu.MemorySpace.VMEM)
    out_flat = pl.pallas_call(
        _decoder_kernel,
        out_shape=jax.ShapeDtypeStruct((batch, F_OUT), jnp.float32),
        in_specs=[vmem] * 8,
        out_specs=vmem,
    )(latent, idx_flat, *kernel_ops)
    return out_flat.reshape(batch, OUT_C, OUT_H, OUT_W)


# ---------------------------------- parameters ----------------------------------
def init_params(key):
    """Parameter init mirroring the module: xavier_uniform (relu gain) for the
    latent Linear, PyTorch-default-style uniform for the convs, BN gamma=1/beta=0."""
    ks = jax.random.split(key, 6)
    bound = float(np.sqrt(2.0) * np.sqrt(6.0 / (LATENT_DIM + LAT_OUT)))
    w_lat = jax.random.uniform(ks[0], (LATENT_DIM, LAT_OUT), jnp.float32, -bound, bound)
    bb = 1.0 / float(np.sqrt(LATENT_DIM))
    b_lat = jax.random.uniform(ks[1], (LAT_OUT,), jnp.float32, -bb, bb)

    fan1 = ENC_C * K1 * K1
    c1b = 1.0 / float(np.sqrt(fan1))
    w1 = jax.random.uniform(ks[2], (C1, ENC_C, K1, K1), jnp.float32, -c1b, c1b)
    b1 = jax.random.uniform(ks[3], (C1,), jnp.float32, -c1b, c1b)
    gamma = jnp.ones((C1,), jnp.float32)
    beta = jnp.zeros((C1,), jnp.float32)

    fan0 = C1 * K0 * K0
    c0b = 1.0 / float(np.sqrt(fan0))
    w0 = jax.random.uniform(ks[4], (OUT_C, C1, K0, K0), jnp.float32, -c0b, c0b)
    b0 = jax.random.uniform(ks[5], (OUT_C,), jnp.float32, -c0b, c0b)
    return dict(w_lat=w_lat, b_lat=b_lat, w1=w1, b1=b1, gamma=gamma, beta=beta,
                w0=w0, b0=b0)


def _conv_as_matrix(weight, in_shape, padding):
    """Dense (F_in, F_out) operator equal to Conv2d(weight, padding=padding) acting
    on row-major (c,h,w)-flattened inputs (bias excluded)."""
    ic, h, w = in_shape
    f_in = ic * h * w
    basis = jnp.eye(f_in, dtype=jnp.float32).reshape(f_in, ic, h, w)
    out = jax.lax.conv_general_dilated(
        basis, weight, (1, 1), [(padding, padding), (padding, padding)],
        dimension_numbers=("NCHW", "OIHW", "NCHW"))
    return out.reshape(f_in, -1)


def prepare_kernel_operands(params):
    """Build the fused-kernel operands (done once, reused for every forward call)."""
    # bf16-round the matmul weights once so the kernel (bf16 operands, f32 accumulate)
    # and the f32 reference see identical weight values.
    rd = lambda a: a.astype(jnp.bfloat16).astype(jnp.float32)
    ref = dict(params)
    ref["w_lat"], ref["w1"], ref["w0"] = rd(params["w_lat"]), rd(params["w1"]), rd(params["w0"])

    m1 = _conv_as_matrix(ref["w1"], (ENC_C, ENC_H, ENC_W), K1 - 1)     # (160, 168)
    m0 = _conv_as_matrix(ref["w0"], (C1, H1, W1U), K0 - 1)             # (336, 128)

    # 0/1 channel-grouping matrix for the BN reduce + broadcast (kept f32: exact stats).
    f = np.arange(F1)
    g_mat = (f[:, None] // (H1 * W1) == f[None, :] // (H1 * W1)).astype(np.float32)

    # 0/1 nearest-neighbour width-expansion matrix for MaxUnpool2d((1, DS0)).
    p, q = np.arange(F1), np.arange(F1U)
    pc, ph, pw = p // (H1 * W1), (p % (H1 * W1)) // W1, p % W1
    qc, qh, qw = q // (H1 * W1U), (q % (H1 * W1U)) // W1U, q % W1U
    e_mat = ((pc[:, None] == qc[None, :]) & (ph[:, None] == qh[None, :]) &
             (pw[:, None] == (qw // DS0)[None, :])).astype(np.float32)

    # Packed slab of all small per-feature vectors (one input -> one DMA).
    slab = np.zeros((5, F1U), np.float32)
    slab[0, :LAT_OUT] = np.asarray(ref["b_lat"])
    slab[1, :F1] = np.repeat(np.asarray(ref["gamma"]), H1 * W1)
    slab[2, :F1] = np.repeat(np.asarray(ref["beta"]), H1 * W1)
    slab[3, :F_OUT] = np.repeat(np.asarray(ref["b0"]), OUT_H * OUT_W)
    slab[4, :] = np.arange(F1U) % (H1 * W1U)
    # NOTE: conv2d_1's bias (params["b1"]) is intentionally NOT shipped to the kernel.

    bf16 = jnp.bfloat16
    ops = (ref["w_lat"].astype(bf16), m1.astype(bf16), jnp.asarray(g_mat),
           jnp.asarray(e_mat, bf16), m0.astype(bf16), jnp.asarray(slab))
    return ops, ref


# ---------------------------------- pure-JAX reference ----------------------------------
def reference_forward(latent, pool_idx, p):
    x = jnp.maximum(latent, 0.0)
    x = x @ p["w_lat"] + p["b_lat"]
    x = x.reshape(-1, ENC_C, ENC_H, ENC_W)
    x = jnp.maximum(x, 0.0)
    x = jax.lax.conv_general_dilated(
        x, p["w1"], (1, 1), [(K1 - 1, K1 - 1)] * 2,
        dimension_numbers=("NCHW", "OIHW", "NCHW")) + p["b1"][None, :, None, None]
    mean = jnp.mean(x, axis=(0, 2, 3), keepdims=True)
    var = jnp.mean((x - mean) ** 2, axis=(0, 2, 3), keepdims=True)
    x = p["gamma"][None, :, None, None] * (x - mean) * jax.lax.rsqrt(var + BN_EPS) \
        + p["beta"][None, :, None, None]
    x = jnp.maximum(x, 0.0)
    src = jnp.repeat(x, DS0, axis=3)
    idx_rep = jnp.repeat(pool_idx, DS0, axis=3)
    target = jnp.arange(H1)[:, None] * W1U + jnp.arange(W1U)[None, :]
    x = jnp.where(idx_rep == target[None, None], src, 0.0)
    x = jax.lax.conv_general_dilated(
        x, p["w0"], (1, 1), [(K0 - 1, K0 - 1)] * 2,
        dimension_numbers=("NCHW", "OIHW", "NCHW")) + p["b0"][None, :, None, None]
    return x


# ---------------------------------- demo ----------------------------------
if __name__ == "__main__":
    key = jax.random.PRNGKey(0)
    k_lat, k_idx, k_par = jax.random.split(key, 3)

    latent = jax.random.normal(k_lat, (BATCH, LATENT_DIM), jnp.float32)

    # synthetic MaxPool2d((1,2), return_indices=True) indices: one valid argmax
    # position per (1, DS0) window of the encoder's pre-pool (H1, W1U) plane.
    offs = jax.random.bernoulli(k_idx, 0.5, (BATCH, C1, H1, W1)).astype(jnp.int32)
    base = jnp.arange(H1)[:, None] * W1U + jnp.arange(W1)[None, :] * DS0
    pooling_indices = [base[None, None, :, :] + offs]          # (B, 4, 6, 7) int32
    unpool_sizes = [(BATCH, C1, H1, W1U)]                       # (B, 4, 6, 14)

    params = init_params(k_par)
    kernel_ops, ref_params = prepare_kernel_operands(params)

    out = decoder_forward(latent, unpool_sizes, pooling_indices, kernel_ops)
    out = jax.block_until_ready(out)

    assert out.shape == (BATCH, OUT_C, OUT_H, OUT_W)
    ref = reference_forward(latent, pooling_indices[-1], ref_params)
    max_err = jnp.max(jnp.abs(out - ref))
    assert jnp.allclose(out, ref, rtol=5e-2, atol=5e-2), max_err
    print("KERNEL_OK")
</pallas_src>

<mosaic_0001>
module attributes {stable_mosaic.version = 11 : i64} {
  func.func @_decoder_kernel(%arg0: memref<4x32xf32, #tpu.memory_space<vmem>>, %arg1: memref<4x168xf32, #tpu.memory_space<vmem>>, %arg2: memref<32x160xbf16, #tpu.memory_space<vmem>>, %arg3: memref<160x168xbf16, #tpu.memory_space<vmem>>, %arg4: memref<168x168xf32, #tpu.memory_space<vmem>>, %arg5: memref<168x336xbf16, #tpu.memory_space<vmem>>, %arg6: memref<336x128xbf16, #tpu.memory_space<vmem>>, %arg7: memref<5x336xf32, #tpu.memory_space<vmem>>, %arg8: memref<4x128xf32, #tpu.memory_space<vmem>>) attributes {dimension_semantics = [], scalar_prefetch = 0 : i64, scratch_operands = 0 : i64, tpu.core_type = #tpu.core_type<tc>} {
    %c0 = arith.constant 0 : index
    %c0_0 = arith.constant 0 : index
    %0 = vector.load %arg7[%c0, %c0_0] : memref<5x336xf32, #tpu.memory_space<vmem>>, vector<5x336xf32>
    %1 = vector.extract_strided_slice %0 {offsets = [0, 0], sizes = [1, 160], strides = [1, 1]} : vector<5x336xf32> to vector<1x160xf32>
    %2 = vector.extract_strided_slice %0 {offsets = [1, 0], sizes = [1, 168], strides = [1, 1]} : vector<5x336xf32> to vector<1x168xf32>
    %3 = vector.extract_strided_slice %0 {offsets = [2, 0], sizes = [1, 168], strides = [1, 1]} : vector<5x336xf32> to vector<1x168xf32>
    %4 = vector.extract_strided_slice %0 {offsets = [3, 0], sizes = [1, 128], strides = [1, 1]} : vector<5x336xf32> to vector<1x128xf32>
    %5 = vector.extract_strided_slice %0 {offsets = [4, 0], sizes = [1, 336], strides = [1, 1]} : vector<5x336xf32> to vector<1x336xf32>
    %c0_1 = arith.constant 0 : index
    %c0_2 = arith.constant 0 : index
    %6 = vector.load %arg0[%c0_1, %c0_2] : memref<4x32xf32, #tpu.memory_space<vmem>>, vector<4x32xf32>
    %cst = arith.constant 0.000000e+00 : f32
    %7 = vector.broadcast %cst : f32 to vector<4x32xf32>
    %8 = arith.maximumf %6, %7 : vector<4x32xf32>
    %9 = arith.truncf %8 : vector<4x32xf32> to vector<4x32xbf16>
    %c0_3 = arith.constant 0 : index
    %c0_4 = arith.constant 0 : index
    %10 = vector.load %arg2[%c0_3, %c0_4] : memref<32x160xbf16, #tpu.memory_space<vmem>>, vector<32x160xbf16>
    %cst_5 = arith.constant dense<0.000000e+00> : vector<4x160xf32>
    %11 = tpu.matmul %9, %10, %cst_5 {dimension_numbers = #tpu.dot_dimension_numbers<[1], [0], [0], [1], [0, 0, 1, 1], [], []>} : vector<4x32xbf16>, vector<32x160xbf16>, vector<4x160xf32> -> vector<4x160xf32>
    %12 = vector.broadcast %1 : vector<1x160xf32> to vector<4x160xf32>
    %13 = arith.addf %11, %12 : vector<4x160xf32>
    %cst_6 = arith.constant 0.000000e+00 : f32
    %14 = vector.broadcast %cst_6 : f32 to vector<4x160xf32>
    %15 = arith.maximumf %13, %14 : vector<4x160xf32>
    %16 = arith.truncf %15 : vector<4x160xf32> to vector<4x160xbf16>
    %c0_7 = arith.constant 0 : index
    %c0_8 = arith.constant 0 : index
    %17 = vector.load %arg3[%c0_7, %c0_8] : memref<160x168xbf16, #tpu.memory_space<vmem>>, vector<160x168xbf16>
    %cst_9 = arith.constant dense<0.000000e+00> : vector<4x168xf32>
    %18 = tpu.matmul %16, %17, %cst_9 {dimension_numbers = #tpu.dot_dimension_numbers<[1], [0], [0], [1], [0, 0, 1, 1], [], []>} : vector<4x160xbf16>, vector<160x168xbf16>, vector<4x168xf32> -> vector<4x168xf32>
    %cst_10 = arith.constant dense<0.000000e+00> : vector<168xf32>
    %19 = vector.multi_reduction <add>, %18, %cst_10 [0] : vector<4x168xf32> to vector<168xf32>
    %20 = vector.shape_cast %19 : vector<168xf32> to vector<1x168xf32>
    %21 = arith.mulf %18, %18 : vector<4x168xf32>
    %cst_11 = arith.constant dense<0.000000e+00> : vector<168xf32>
    %22 = vector.multi_reduction <add>, %21, %cst_11 [0] : vector<4x168xf32> to vector<168xf32>
    %23 = vector.shape_cast %22 : vector<168xf32> to vector<1x168xf32>
    %c0_12 = arith.constant 0 : index
    %c0_13 = arith.constant 0 : index
    %24 = vector.load %arg4[%c0_12, %c0_13] : memref<168x168xf32, #tpu.memory_space<vmem>>, vector<168x168xf32>
    %cst_14 = arith.constant dense<0.000000e+00> : vector<1x168xf32>
    %25 = tpu.matmul %20, %24, %cst_14 {dimension_numbers = #tpu.dot_dimension_numbers<[1], [0], [0], [1], [0, 0, 1, 1], [], []>} : vector<1x168xf32>, vector<168x168xf32>, vector<1x168xf32> -> vector<1x168xf32>
    %c0_15 = arith.constant 0 : index
    %c0_16 = arith.constant 0 : index
    %26 = vector.load %arg4[%c0_15, %c0_16] : memref<168x168xf32, #tpu.memory_space<vmem>>, vector<168x168xf32>
    %cst_17 = arith.constant dense<0.000000e+00> : vector<1x168xf32>
    %27 = tpu.matmul %23, %26, %cst_17 {dimension_numbers = #tpu.dot_dimension_numbers<[1], [0], [0], [1], [0, 0, 1, 1], [], []>} : vector<1x168xf32>, vector<168x168xf32>, vector<1x168xf32> -> vector<1x168xf32>
    %cst_18 = arith.constant 0.00595238106 : f32
    %28 = vector.broadcast %cst_18 : f32 to vector<1x168xf32>
    %29 = arith.mulf %25, %28 : vector<1x168xf32>
    %cst_19 = arith.constant 0.00595238106 : f32
    %30 = vector.broadcast %cst_19 : f32 to vector<1x168xf32>
    %31 = arith.mulf %27, %30 : vector<1x168xf32>
    %32 = arith.mulf %29, %29 : vector<1x168xf32>
    %33 = arith.subf %31, %32 : vector<1x168xf32>
    %cst_20 = arith.constant 9.99999974E-6 : f32
    %34 = vector.broadcast %cst_20 : f32 to vector<1x168xf32>
    %35 = arith.addf %33, %34 : vector<1x168xf32>
    %36 = math.rsqrt %35 : vector<1x168xf32>
    %37 = arith.mulf %2, %36 : vector<1x168xf32>
    %38 = arith.mulf %29, %37 : vector<1x168xf32>
    %39 = arith.subf %3, %38 : vector<1x168xf32>
    %40 = vector.broadcast %37 : vector<1x168xf32> to vector<4x168xf32>
    %41 = arith.mulf %18, %40 : vector<4x168xf32>
    %42 = vector.broadcast %39 : vector<1x168xf32> to vector<4x168xf32>
    %43 = arith.addf %41, %42 : vector<4x168xf32>
    %cst_21 = arith.constant 0.000000e+00 : f32
    %44 = vector.broadcast %cst_21 : f32 to vector<4x168xf32>
    %45 = arith.maximumf %43, %44 : vector<4x168xf32>
    %c0_22 = arith.constant 0 : index
    %c0_23 = arith.constant 0 : index
    %46 = vector.load %arg5[%c0_22, %c0_23] : memref<168x336xbf16, #tpu.memory_space<vmem>>, vector<168x336xbf16>
    %47 = arith.truncf %45 : vector<4x168xf32> to vector<4x168xbf16>
    %cst_24 = arith.constant dense<0.000000e+00> : vector<4x336xf32>
    %48 = tpu.matmul %47, %46, %cst_24 {dimension_numbers = #tpu.dot_dimension_numbers<[1], [0], [0], [1], [0, 0, 1, 1], [], []>} : vector<4x168xbf16>, vector<168x336xbf16>, vector<4x336xf32> -> vector<4x336xf32>
    %c0_25 = arith.constant 0 : index
    %c0_26 = arith.constant 0 : index
    %49 = vector.load %arg1[%c0_25, %c0_26] : memref<4x168xf32, #tpu.memory_space<vmem>>, vector<4x168xf32>
    %50 = arith.truncf %49 : vector<4x168xf32> to vector<4x168xbf16>
    %cst_27 = arith.constant dense<0.000000e+00> : vector<4x336xf32>
    %51 = tpu.matmul %50, %46, %cst_27 {dimension_numbers = #tpu.dot_dimension_numbers<[1], [0], [0], [1], [0, 0, 1, 1], [], []>} : vector<4x168xbf16>, vector<168x336xbf16>, vector<4x336xf32> -> vector<4x336xf32>
    %52 = vector.broadcast %5 : vector<1x336xf32> to vector<4x336xf32>
    %53 = arith.subf %51, %52 : vector<4x336xf32>
    %54 = math.absf %53 : vector<4x336xf32>
    %cst_28 = arith.constant 5.000000e-01 : f32
    %55 = vector.broadcast %cst_28 : f32 to vector<4x336xf32>
    %56 = arith.cmpf olt, %54, %55 : vector<4x336xf32>
    %cst_29 = arith.constant 0.000000e+00 : f32
    %57 = vector.broadcast %cst_29 : f32 to vector<4x336xf32>
    %58 = arith.select %56, %48, %57 : vector<4x336xi1>, vector<4x336xf32>
    %59 = arith.truncf %58 : vector<4x336xf32> to vector<4x336xbf16>
    %c0_30 = arith.constant 0 : index
    %c0_31 = arith.constant 0 : index
    %60 = vector.load %arg6[%c0_30, %c0_31] : memref<336x128xbf16, #tpu.memory_space<vmem>>, vector<336x128xbf16>
    %cst_32 = arith.constant dense<0.000000e+00> : vector<4x128xf32>
    %61 = tpu.matmul %59, %60, %cst_32 {dimension_numbers = #tpu.dot_dimension_numbers<[1], [0], [0], [1], [0, 0, 1, 1], [], []>} : vector<4x336xbf16>, vector<336x128xbf16>, vector<4x128xf32> -> vector<4x128xf32>
    %62 = vector.broadcast %4 : vector<1x128xf32> to vector<4x128xf32>
    %63 = arith.addf %61, %62 : vector<4x128xf32>
    %c0_33 = arith.constant 0 : index
    %c0_34 = arith.constant 0 : index
    %64 = vector.load %arg8[%c0_33, %c0_34] : memref<4x128xf32, #tpu.memory_space<vmem>>, vector<4x128xf32>
    tpu.vector_store %arg8[%c0_33, %c0_34], %63 {strides = array<i32>} : memref<4x128xf32, #tpu.memory_space<vmem>>, vector<4x128xf32>,
    return
  }
}

</mosaic_0001>

<bundles_post_ra>
// kernel: tpu_custom_call.1
= control target key start
LH: loop header
LB: loop body
LE: loop exit
PB: predicated region body
PF: predicated region fallthrough
CT: control target
= control target key end

     0   :  { %13 = vsyncpa [#allocation3], 0  ;;  %s2348_s0 = inlined_call_operand.hbm [shape: f32[4,32], index: 0, kind: input, shape index: {}]   ;;  %s2349_s1 = inlined_call_operand.hbm [shape: f32[4,168], index: 1, kind: input, shape index: {}]   ;;  %s2350_s2 = inlined_call_operand.hbm [shape: bf16[32,160], index: 2, kind: input, shape index: {}]   ;;  %s2351_s3 = inlined_call_operand.hbm [shape: bf16[160,168], index: 3, kind: input, shape index: {}]   ;;  %s2352_s4 = inlined_call_operand.hbm [shape: f32[168,168], index: 4, kind: input, shape index: {}]   ;;  %s2353_s5 = inlined_call_operand.hbm [shape: bf16[168,336], index: 5, kind: input, shape index: {}]   ;;  %s2354_s6 = inlined_call_operand.hbm [shape: bf16[336,128], index: 6, kind: input, shape index: {}]   ;;  %s2355_s7 = inlined_call_operand.hbm [shape: f32[5,336], index: 7, kind: input, shape index: {}]   ;;  %s2356_s8 = inlined_call_operand.hbm [shape: f32[4,128], index: 8, kind: output, shape index: {}]  }
   0x1   :  { %14 = vsyncpa [#allocation6], 0 }
   0x2   :  { %15 = vsyncpa [#allocation9], 0 }
   0x3   :  { %16 = vsyncpa [#allocation12], 0 }
   0x4   :  { %17 = vsyncpa [#allocation15], 0  ;;  %s35_s29 = sshll.u32 %s2349_s1, 4  ;;  %s36_s29 = int_to_ptr.hbm [resolvable:$true] %s35_s29 }
   0x5   :  { %18 = vsyncpa [#allocation4], 0  ;;  %s1986_s30 = smov [#allocation5]   ;;  %s58_s12 = sshll.u32 %s2351_s3, 4  ;;  %s59_s12 = int_to_ptr.hbm [resolvable:$true] %s58_s12 }
   0x6   :  { %s37_s9 = sshll.u32 %s1986_s30, 4  ;;  %s1987_s13 = smov [#allocation8]   ;;  %s38_s9 = int_to_ptr.vmem [resolvable:$true] %s37_s9 }
   0x7   :  { %40 = dma.hbm_to_vmem [thread:$0]  %s36_s29, 128, %s38_s9, [#allocation6]  }
   0x8   :  { %s60_s14 = sshll.u32 %s1987_s13, 4  ;;  %s84_s17 = sshll.u32 %s2353_s5, 4  ;;  %s61_s14 = int_to_ptr.vmem [resolvable:$true] %s60_s14  ;;  %s85_s17 = int_to_ptr.hbm [resolvable:$true] %s84_s17 }
   0x9   :  { %s1988_s1 = smov 128   ;;  %s1989_s18 = smov 8  }
   0xa   :  { %66 = dma.hbm_to_vmem [thread:$0]  %s59_s12, 2560, %s61_s14, [#allocation9], %s1988_s1, %s1988_s1, %s1989_s18  }
   0xb   :  { %s1990_s19 = smov [#allocation11]   ;;  %s24_s23 = sshll.u32 %s2348_s0, 4  ;;  %s25_s23 = int_to_ptr.hbm [resolvable:$true] %s24_s23 }
   0xc   :  { %s86_s20 = sshll.u32 %s1990_s19, 4  ;;  %s1991_s3 = smov 192   ;;  %s87_s20 = int_to_ptr.vmem [resolvable:$true] %s86_s20 }
   0xd   :  { %s1992_s24 = smov 12   ;;  %s1993_s25 = smov [#allocation2]  }
   0xe   :  { %92 = dma.hbm_to_vmem [thread:$0]  %s85_s17, 4032, %s87_s20, [#allocation12], %s1991_s3, %s1991_s3, %s1992_s24  }
   0xf   :  { %s26_s26 = sshll.u32 %s1993_s25, 4  ;;  %s45_s28 = sshll.u32 %s2350_s2, 4  ;;  %s27_s26 = int_to_ptr.vmem [resolvable:$true] %s26_s26  ;;  %s46_s28 = int_to_ptr.hbm [resolvable:$true] %s45_s28 }
  0x10   :  { %29 = dma.hbm_to_vmem [thread:$0]  %s25_s23, 64, %s27_s26, [#allocation3]  }
  0x11   :  { %s71_s9 = sshll.u32 %s2352_s4, 4  ;;  %s1994_s10 = smov [#allocation7]   ;;  %s72_s9 = int_to_ptr.hbm [resolvable:$true] %s71_s9 }
  0x12   :  { %s47_s11 = sshll.u32 %s1994_s10, 4  ;;  %s1995_s0 = smov [#allocation10]   ;;  %s48_s11 = int_to_ptr.vmem [resolvable:$true] %s47_s11 }
  0x13   :  { %53 = dma.hbm_to_vmem [thread:$0]  %s46_s28, 512, %s48_s11, [#allocation6], %s1988_s1, %s1988_s1, %s1989_s18  }
  0x14   :  { %s73_s12 = sshll.u32 %s1995_s0, 4  ;;  %s1996_s13 = smov 256   ;;  %s74_s12 = int_to_ptr.vmem [resolvable:$true] %s73_s12 }
  0x15   :  { %s1997_s14 = smov 16   ;;  %s97_s16 = sshll.u32 %s2354_s6, 4  ;;  %s98_s16 = int_to_ptr.hbm [resolvable:$true] %s97_s16 }
  0x16   :  { %79 = dma.hbm_to_vmem [thread:$0]  %s72_s9, 5376, %s74_s12, [#allocation9], %s1996_s13, %s1996_s13, %s1997_s14  }
  0x17   :  { %s1998_s17 = smov [#allocation13]   ;;  %s111_s21 = sshll.u32 %s2355_s7, 4  ;;  %s112_s21 = int_to_ptr.hbm [resolvable:$true] %s111_s21 }
  0x18   :  { %s99_s19 = sshll.u32 %s1998_s17, 4  ;;  %s1999_s22 = smov 64   ;;  %s100_s19 = int_to_ptr.vmem [resolvable:$true] %s99_s19 }
  0x19   :  { %s2000_s1 = smov 4   ;;  %s2001_s18 = smov [#allocation14]  }
  0x1a   :  { %105 = dma.hbm_to_vmem [thread:$0]  %s98_s16, 2688, %s100_s19, [#allocation12], %s1999_s22, %s1999_s22, %s2000_s1  }
  0x1b   :  { %s113_s23 = sshll.u32 %s2001_s18, 4  ;;  %s114_s23 = int_to_ptr.vmem [resolvable:$true] %s113_s23 }
  0x1c   :  { %116 = dma.hbm_to_vmem [thread:$0]  %s112_s21, 384, %s114_s23, [#allocation15]  }
  0x1d   :  { %1974 = dma.done.wait [#allocation3], 64  }
  0x1e   :  { %1975 = vsyncadd [#allocation3], 4294967232 }
  0x1f   :  { %1976 = dma.done.wait [#allocation6], 640  }
  0x20   :  { %1977 = vsyncadd [#allocation6], 4294966656 }
  0x21   :  { %1978 = dma.done.wait [#allocation9], 7936  }
  0x22   :  { %1979 = vsyncadd [#allocation9], 4294959360 }
  0x23   :  { %1980 = dma.done.wait [#allocation12], 6720  }
  0x24   :  { %1981 = vsyncadd [#allocation12], 4294960576 }
  0x25   :  { %1982 = dma.done.wait [#allocation15], 384  }
  0x26   :  { %1983 = vsyncadd [#allocation15], 4294966912  ;;  %v1350_v0 = vld [vmem:[#allocation7 + $0x10] sm:$0xf]  ;;  %v1664_v1 = vld [vmem:[#allocation7 + $0x14] sm:$0xf0] }
  0x27   :  { %v1663_v2 = vld [vmem:[#allocation7 + $0x14] sm:$0xf]  ;;  %v1351_v3 = vor.u32 %v1664_v1, %v1350_v0  ;;  %v1352_v4 = vld [vmem:[#allocation7 + $0x18] sm:$0xf0]  ;;  %v1342_v5 = vld [vmem:[#allocation7] sm:$0xf] }
  0x28   :  { %v1662_v6 = vld [vmem:[#allocation7 + $0x4] sm:$0xf0]  ;;  %v1355_v7 = vor.u32 %v1663_v2, %v1352_v4  ;;  %v1661_v8 = vld [vmem:[#allocation7 + $0x4] sm:$0xf]  ;;  %v1344_v9 = vld [vmem:[#allocation7 + $0x8] sm:$0xf0] }
  0x29   :  { %v153_v10 = vld [vmem:[#allocation2] sm:$0xf]  ;;  %192 = vmatpush.bf16.msra.mxu0 %v1351_v3  ;;  %v1343_v11 = vor.u32 %v1662_v6, %v1342_v5  ;;  %v1416_v13 = vld [vmem:[#allocation8 + $0x70] sm:$0xf]  ;;  %v1680_v14 = vld [vmem:[#allocation8 + $0x74] sm:$0xf0]  ;;  %v1347_v15 = vor.u32 %v1661_v8, %v1344_v9 }
  0x2a   :  { %v154_v12 = vmax.f32 %v153_v10, 0.0  ;;  %205 = vmatpush.bf16.msra.mxu1 %v1355_v7  ;;  %v1417_v16 = vor.u32 %v1680_v14, %v1416_v13  ;;  %v1679_v17 = vld [vmem:[#allocation8 + $0x74] sm:$0xf]  ;;  %v1418_v18 = vld [vmem:[#allocation8 + $0x78] sm:$0xf0]  ;;  %vm182_vm0 = vcmask 261120  }
  0x2b   :  { %v1408_v19 = vld [vmem:[#allocation8 + $0x60] sm:$0xf]  ;;  %v1421_v20 = vor.u32 %v1679_v17, %v1418_v18  ;;  %v1678_v21 = vld [vmem:[#allocation8 + $0x64] sm:$0xf0]  ;;  %v1677_v22 = vld [vmem:[#allocation8 + $0x64] sm:$0xf] }
  0x2c   :  { %v1410_v23 = vld [vmem:[#allocation8 + $0x68] sm:$0xf0]  ;;  %v155_v24 = vpack.c.bf16 %v154_v12, %v154_v12  ;;  %339 = vmatpush.bf16.msra.mxu2 %v1417_v16  ;;  %v1409_v25 = vor.u32 %v1678_v21, %v1408_v19  ;;  %v1400_v26 = vld [vmem:[#allocation8 + $0x50] sm:$0xf]  ;;  %v1676_v27 = vld [vmem:[#allocation8 + $0x54] sm:$0xf0] }
  0x2d   :  { %193 = vmatpush.bf16.msra.mxu0 %v1343_v11  ;;  %v1413_v28 = vor.u32 %v1677_v22, %v1410_v23  ;;  %v1683_v29 = vld [vmem:[#allocation8 + $0x94] sm:$0xf]  ;;  %v1402_v31 = vld [vmem:[#allocation8 + $0x58] sm:$0xf0]  ;;  %v1401_v33 = vor.u32 %v1676_v27, %v1400_v26  ;;  %v1392_v35 = vld [vmem:[#allocation8 + $0x40] sm:$0xf] }
  0x2e   :  { %206 = vmatpush.bf16.msra.mxu1 %v1347_v15  ;;  %v1675_v30 = vld [vmem:[#allocation8 + $0x54] sm:$0xf]  ;;  %v1434_v32 = vld [vmem:[#allocation8 + $0x98] sm:$0xf0]  ;;  %v1674_v36 = vld [vmem:[#allocation8 + $0x44] sm:$0xf0] }
  0x2f   :  { %v1437_v34 = vor.u32 %v1683_v29, %v1434_v32  ;;  %v1405_v37 = vor.u32 %v1675_v30, %v1402_v31  ;;  %v1681_v38 = vld [vmem:[#allocation8 + $0x84] sm:$0xf]  ;;  %v1426_v39 = vld [vmem:[#allocation8 + $0x88] sm:$0xf0]  ;;  %v1393_v43 = vor.u32 %v1674_v36, %v1392_v35  ;;  %v1384_v44 = vld [vmem:[#allocation8 + $0x30] sm:$0xf] }
  0x30   :  { %1356 = vmatmul.msk.bf16.vlgmr.msra.gmra.mxu0 %vm182_vm0, %v155_v24  ;;  %340 = vmatpush.bf16.msra.mxu2 %v1409_v25  ;;  %v1673_v40 = vld [vmem:[#allocation8 + $0x44] sm:$0xf]  ;;  %v1394_v41 = vld [vmem:[#allocation8 + $0x48] sm:$0xf0]  ;;  %v1429_v42 = vor.u32 %v1681_v38, %v1426_v39  ;;  %v1672_v45 = vld [vmem:[#allocation8 + $0x34] sm:$0xf0] }
  0x31   :  { %365 = vmatpush.bf16.msrb.mxu0 %v1421_v20  ;;  %1357 = vmatmul.msk.bf16.vlgmr.msra.gmra.mxu1 %vm182_vm0, %v155_v24  ;;  %v1397_v46 = vor.u32 %v1673_v40, %v1394_v41  ;;  %v1671_v47 = vld [vmem:[#allocation8 + $0x34] sm:$0xf]  ;;  %v1386_v48 = vld [vmem:[#allocation8 + $0x38] sm:$0xf0]  ;;  %v1385_v49 = vor.u32 %v1672_v45, %v1384_v44  ;;  %v1376_v50 = vld [vmem:[#allocation8 + $0x20] sm:$0xf] }
  0x32   :  { %384 = vmatpush.bf16.msrb.mxu1 %v1437_v34  ;;  %v1670_v51 = vld [vmem:[#allocation8 + $0x24] sm:$0xf0]  ;;  %v1389_v52 = vor.u32 %v1671_v47, %v1386_v48  ;;  %v1669_v53 = vld [vmem:[#allocation8 + $0x24] sm:$0xf]  ;;  %v1378_v54 = vld [vmem:[#allocation8 + $0x28] sm:$0xf0] }
  0x33   :  { %v1377_v55 = vor.u32 %v1670_v51, %v1376_v50  ;;  %v1381_v56 = vor.u32 %v1669_v53, %v1378_v54  ;;  %v1368_v57 = vld [vmem:[#allocation8 + $0x10] sm:$0xf]  ;;  %v1668_v58 = vld [vmem:[#allocation8 + $0x14] sm:$0xf0]  ;;  %v1667_v62 = vld [vmem:[#allocation8 + $0x14] sm:$0xf] }
  0x34   :  { %341 = vmatpush.bf16.msra.mxu2 %v1401_v33  ;;  %v1432_v59 = vld [vmem:[#allocation8 + $0x90] sm:$0xf]  ;;  %v1369_v60 = vor.u32 %v1668_v58, %v1368_v57  ;;  %v1684_v61 = vld [vmem:[#allocation8 + $0x94] sm:$0xf0]  ;;  %v1370_v0 = vld [vmem:[#allocation8 + $0x18] sm:$0xf0] }
  0x35   :  { %366 = vmatpush.bf16.msrb.mxu0 %v1413_v28  ;;  %v1433_v63 = vor.u32 %v1684_v61, %v1432_v59  ;;  %v1373_v1 = vor.u32 %v1667_v62, %v1370_v0  ;;  %v1360_v2 = vld [vmem:[#allocation8] sm:$0xf]  ;;  %v1666_v3 = vld [vmem:[#allocation8 + $0x4] sm:$0xf0]  ;;  %v1665_v7 = vld [vmem:[#allocation8 + $0x4] sm:$0xf] }
  0x36   :  { %385 = vmatpush.bf16.msrb.mxu1 %v1429_v42  ;;  %v1424_v4 = vld [vmem:[#allocation8 + $0x80] sm:$0xf]  ;;  %v1361_v5 = vor.u32 %v1666_v3, %v1360_v2  ;;  %v1682_v6 = vld [vmem:[#allocation8 + $0x84] sm:$0xf0]  ;;  %v1362_v8 = vld [vmem:[#allocation8 + $0x8] sm:$0xf0] }
  0x37   :  { %358 = vmatpush.bf16.msra.mxu3 %v1433_v63  ;;  %v1425_v9 = vor.u32 %v1682_v6, %v1424_v4  ;;  %v1365_v10 = vor.u32 %v1665_v7, %v1362_v8  ;;  %v453_v11 = vld [vmem:[#allocation10 + $0xf0] sm:$0xff]  ;;  %v451_v12 = vld [vmem:[#allocation10 + $0xe0] sm:$0xff]  ;;  %v2074_v13 = vld [vmem:[#allocation10 + $0xf8] sm:$0xff]  ;;  %vm399_vm1 = vcmask 322560   ;;  %vm391_vm2 = vcmask 1043456   ;;  %s2002_s6 = smov [#allocation16]  }
  0x38   :  { %342 = vmatpush.bf16.msra.mxu2 %v1393_v43  ;;  %v2077_v14 = vld [vmem:[#allocation10 + $0xe8] sm:$0xff]  ;;  %v449_v15 = vld [vmem:[#allocation10 + $0xd0] sm:$0xff]  ;;  %v2079_v16 = vld [vmem:[#allocation10 + $0xd8] sm:$0xff]  ;;  %vm465_vm3 = vcmask 326656   ;;  %vm1275_vm15 = vcmask 654336   ;;  %s1324_s7 = sshll.u32 %s2002_s6, 4  ;;  %s1325_s7 = int_to_ptr.vmem [resolvable:$true] %s1324_s7 }
  0x39   :  { %367 = vmatpush.bf16.msrb.mxu0 %v1405_v37  ;;  %v2082_v17 = vld [vmem:[#allocation10 + $0x140] sm:$0xff]  ;;  %v2084_v19 = vld [vmem:[#allocation10 + $0xc8] sm:$0xff]  ;;  %v445_v20 = vld [vmem:[#allocation10 + $0xb0] sm:$0xff]  ;;  %s1326_s25 = sshll.u32 %s2356_s8, 4  ;;  %s1327_s25 = int_to_ptr.hbm [resolvable:$true] %s1326_s25 }
  0x3a   :  { %v447_v18 = vld [vmem:[#allocation10 + $0xc0] sm:$0xff]  ;;  %500 = vmatpush.msra.mxu1 %v2082_v17  ;;  %v2088_v21 = vld [vmem:[#allocation10 + $0xb8] sm:$0xff]  ;;  %v2100_v37 = vld [vmem:[#allocation10 + $0x130] sm:$0xff] }
  0x3b   :  { %359 = vmatpush.bf16.msra.mxu3 %v1425_v9  ;;  %v443_v22 = vld [vmem:[#allocation10 + $0xa0] sm:$0xff]  ;;  %v2092_v23 = vld [vmem:[#allocation14] sm:$0x1f]  ;;  %v2103_v39 = vld [vmem:[#allocation10 + $0xa8] sm:$0xff] }
  0x3c   :  { %343 = vmatpush.bf16.msra.mxu2 %v1385_v49  ;;  %v2094_v24 = vld [vmem:[#allocation14 + $0x8] sm:$0x1f]  ;;  %v160_v25 = vperm.slane %v2092_v23, 0  ;;  %501 = vmatpush.msra.mxu1 %v2100_v37  ;;  %v441_v38 = vld [vmem:[#allocation10 + $0x90] sm:$0xff]  ;;  %v2112_v45 = vld [vmem:[#allocation10 + $0x88] sm:$0xff] }
  0x3d   :  { %368 = vmatpush.bf16.msrb.mxu0 %v1397_v46  ;;  %v161_v26 = vperm.slane %v2094_v24, 0  ;;  %v2106_v40 = vld [vmem:[#allocation10 + $0x120] sm:$0xff]  ;;  %v2109_v42 = vld [vmem:[#allocation10 + $0x98] sm:$0xff]  ;;  %v457_v43 = vld [vmem:[#allocation10 + $0x110] sm:$0xff] }
  0x3e   :  { %502 = vmatpush.msra.mxu1 %v2106_v40  ;;  %v439_v41 = vld [vmem:[#allocation10 + $0x80] sm:$0xff]  ;;  %v437_v44 = vld [vmem:[#allocation10 + $0x70] sm:$0xff]  ;;  %v2115_v48 = vld [vmem:[#allocation10 + $0x78] sm:$0xff] }
  0x3f   :  { %469 = vmatpush.msrb.mxu3 %v453_v11  ;;  %v455_v46 = vld [vmem:[#allocation10 + $0x100] sm:$0xff]  ;;  %v2117_v49 = vld [vmem:[#allocation10 + $0x148] sm:$0xff]  ;;  %v433_v50 = vld [vmem:[#allocation10 + $0x50] sm:$0xff] }
  0x40   :  { %344 = vmatpush.bf16.msra.mxu2 %v1377_v55  ;;  %503 = vmatpush.msra.mxu1 %v457_v43  ;;  %v435_v47 = vld [vmem:[#allocation10 + $0x60] sm:$0xff]  ;;  %v2121_v51 = vld [vmem:[#allocation10 + $0x68] sm:$0xff]  ;;  %v2127_v54 = vld [vmem:[#allocation10 + $0x58] sm:$0xff] }
  0x41   :  { %369 = vmatpush.bf16.msrb.mxu0 %v1389_v52  ;;  %470 = vmatpush.msrb.mxu3 %v451_v12  ;;  %v2123_v52 = vld [vmem:[#allocation10 + $0x138] sm:$0xff]  ;;  %v431_v53 = vld [vmem:[#allocation10 + $0x40] sm:$0xff]  ;;  %v2129_v55 = vld [vmem:[#allocation10 + $0x128] sm:$0xff] }
  0x42   :  { %504 = vmatpush.msra.mxu1 %v455_v46  ;;  %v2133_v57 = vld [vmem:[#allocation10 + $0x48] sm:$0xff]  ;;  %v2135_v58 = vld [vmem:[#allocation10 + $0x118] sm:$0xff]  ;;  %v427_v59 = vld [vmem:[#allocation10 + $0x20] sm:$0xff] }
  0x43   :  { %471 = vmatpush.msrb.mxu3 %v449_v15  ;;  %v2141_v61 = vld [vmem:[#allocation10 + $0x108] sm:$0xff]  ;;  %v425_v62 = vld [vmem:[#allocation10 + $0x10] sm:$0xff]  ;;  %v423_v0 = vld [vmem:[#allocation10] sm:$0xff] }
  0x44   :  { %345 = vmatpush.bf16.msra.mxu2 %v1369_v60  ;;  %v2139_v60 = vld [vmem:[#allocation10 + $0x38] sm:$0xff]  ;;  %v2145_v63 = vld [vmem:[#allocation10 + $0x28] sm:$0xff] }
  0x45   :  { %370 = vmatpush.bf16.msrb.mxu0 %v1381_v56  ;;  %472 = vmatpush.msrb.mxu3 %v447_v18  ;;  %v429_v56 = vld [vmem:[#allocation10 + $0x30] sm:$0xff]  ;;  %v2152_v2 = vld [vmem:[#allocation10 + $0x8] sm:$0xff] }
  0x47   :  { %473 = vmatpush.msrb.mxu3 %v445_v20 }
  0x48   :  { %346 = vmatpush.bf16.msra.mxu2 %v1361_v5 }
  0x49   :  { %371 = vmatpush.bf16.msrb.mxu0 %v1373_v1  ;;  %474 = vmatpush.msrb.mxu3 %v443_v22  ;;  %v2148_v1 = vld [vmem:[#allocation10 + $0x18] sm:$0xff] }
  0x4b   :  { %475 = vmatpush.msrb.mxu3 %v441_v38 }
  0x4c   :  { %509 = vmatpush.msrb.mxu2 %v2074_v13 }
  0x4d   :  { %372 = vmatpush.bf16.msrb.mxu0 %v1365_v10  ;;  %476 = vmatpush.msrb.mxu3 %v439_v41 }
  0x4e   :  { %510 = vmatpush.msrb.mxu2 %v2077_v14 }
  0x4f   :  { %477 = vmatpush.msrb.mxu3 %v437_v44 }
  0x50   :  { %511 = vmatpush.msrb.mxu2 %v2079_v16 }
  0x51   :  { %552 = vmatpush.msra.mxu0 %v453_v11  ;;  %478 = vmatpush.msrb.mxu3 %v435_v47 }
  0x52   :  { %512 = vmatpush.msrb.mxu2 %v2084_v19 }
  0x53   :  { %553 = vmatpush.msra.mxu0 %v451_v12  ;;  %479 = vmatpush.msrb.mxu3 %v433_v50 }
  0x54   :  { %513 = vmatpush.msrb.mxu2 %v2088_v21 }
  0x55   :  { %554 = vmatpush.msra.mxu0 %v449_v15  ;;  %480 = vmatpush.msrb.mxu3 %v431_v53 }
  0x56   :  { %514 = vmatpush.msrb.mxu2 %v2103_v39 }
  0x57   :  { %555 = vmatpush.msra.mxu0 %v447_v18  ;;  %481 = vmatpush.msrb.mxu3 %v429_v56 }
  0x58   :  { %515 = vmatpush.msrb.mxu2 %v2109_v42 }
  0x59   :  { %556 = vmatpush.msra.mxu0 %v445_v20  ;;  %482 = vmatpush.msrb.mxu3 %v427_v59 }
  0x5a   :  { %516 = vmatpush.msrb.mxu2 %v2112_v45 }
  0x5b   :  { %557 = vmatpush.msra.mxu0 %v443_v22  ;;  %483 = vmatpush.msrb.mxu3 %v425_v62 }
  0x5c   :  { %517 = vmatpush.msrb.mxu2 %v2115_v48 }
  0x5d   :  { %558 = vmatpush.msra.mxu0 %v441_v38  ;;  %484 = vmatpush.msrb.mxu3 %v423_v0 }
  0x5e   :  { %518 = vmatpush.msrb.mxu2 %v2121_v51 }
  0x5f   :  { %559 = vmatpush.msra.mxu0 %v439_v41 }
  0x60   :  { %519 = vmatpush.msrb.mxu2 %v2127_v54 }
  0x61   :  { %560 = vmatpush.msra.mxu0 %v437_v44 }
  0x62   :  { %520 = vmatpush.msrb.mxu2 %v2133_v57 }
  0x63   :  { %561 = vmatpush.msra.mxu0 %v435_v47 }
  0x64   :  { %521 = vmatpush.msrb.mxu2 %v2139_v60 }
  0x65   :  { %562 = vmatpush.msra.mxu0 %v433_v50 }
  0x66   :  { %522 = vmatpush.msrb.mxu2 %v2145_v63 }
  0x67   :  { %563 = vmatpush.msra.mxu0 %v431_v53 }
  0x68   :  { %523 = vmatpush.msrb.mxu2 %v2148_v1 }
  0x69   :  { %564 = vmatpush.msra.mxu0 %v429_v56 }
  0x6a   :  { %524 = vmatpush.msrb.mxu2 %v2152_v2 }
  0x6b   :  { %565 = vmatpush.msra.mxu0 %v427_v59 }
  0x6d   :  { %566 = vmatpush.msra.mxu0 %v425_v62  ;;  %v2208_v62 = vld [vmem:[#allocation11 + $0xf0] sm:$0xff] }
  0x6f   :  { %567 = vmatpush.msra.mxu0 %v423_v0 }
  0xad   :  { %v195_v27 = vpop.f32.mrf.mxu0 }
  0xae   :  { %v196_v28 = vadd.f32 %v195_v27, %v160_v25  ;;  %v208_v29 = vpop.f32.mrf.mxu1 }
  0xaf   :  { %v209_v30 = vadd.f32 %v208_v29, %v161_v26 }
  0xb0   :  { %v212_v31 = vmax.f32 %v196_v28, 0.0 }
  0xb1   :  { %v213_v32 = vmax.f32 %v209_v30, 0.0 }
  0xb2   :  { %v214_v33 = vpack.c.bf16 %v212_v31, %v212_v31 }
  0xb3   :  { %v215_v34 = vpack.c.bf16 %v213_v32, %v213_v32 }
  0xb4   :  { %347 = vmatmul.bf16.vlgmr.msra.gmra.mxu2 %v214_v33  ;;  %373 = vmatmul.bf16.vlgmr.msrb.gmra.mxu0 %v214_v33 }
  0xb5   :  { %1438 = vmatmul.msk.bf16.vlgmr.msra.gmra.mxu3 %vm182_vm0, %v215_v34  ;;  %1439 = vmatmul.msk.bf16.vlgmr.msrb.gmra.mxu1 %vm182_vm0, %v215_v34  ;;  %v197_v35 = vpop.f32.mrf.mxu0 }
  0xb6   :  { %v210_v36 = vpop.f32.mrf.mxu1  ;;  %540 = vmatpush.msrb.mxu1 %v2117_v49  ;;  %583 = vmatpush.msra.mxu3 %v2082_v17 }
  0xb8   :  { %541 = vmatpush.msrb.mxu1 %v2123_v52  ;;  %584 = vmatpush.msra.mxu3 %v2100_v37 }
  0xba   :  { %542 = vmatpush.msrb.mxu1 %v2129_v55  ;;  %585 = vmatpush.msra.mxu3 %v2106_v40 }
  0xbc   :  { %543 = vmatpush.msrb.mxu1 %v2135_v58  ;;  %586 = vmatpush.msra.mxu3 %v457_v43 }
  0xbe   :  { %544 = vmatpush.msrb.mxu1 %v2141_v61  ;;  %587 = vmatpush.msra.mxu3 %v455_v46 }
 0x131   :  { %v374_v3 = vpop.f32.mrf.mxu0 }
 0x132   :  { %v387_v4 = vpop.f32.mrf.mxu1 }
 0x133   :  { %v2157_v5 = vadd.f32 %v387_v4, %v374_v3  ;;  %v1494_v4 = vld [vmem:[#allocation11 + $0x60] sm:$0xf] }
 0x135   :  { %v400_v6 = vsel %vm399_vm1, %v2157_v5, 0.0  ;;  %v408_v7 = vmul.f32 %v2157_v5, %v2157_v5 }
 0x136   :  { %v401_v8 = vrot.slane %v400_v6, 4 }
 0x137   :  { %v416_v9 = vsel %vm399_vm1, %v408_v7, 0.0  ;;  %v348_v10 = vpop.f32.mrf.mxu2 }
 0x138   :  { %v402_v11 = vadd.f32 %v401_v8, %v400_v6  ;;  %v361_v12 = vpop.f32.mrf.mxu3  ;;  %v417_v20 = vrot.slane %v416_v9, 4  ;;  %v1698_v6 = vld [vmem:[#allocation11 + $0x68] sm:$0xf0]  ;;  %v1502_v8 = vld [vmem:[#allocation11 + $0x68] sm:$0xf] }
 0x139   :  { %v2162_v15 = vadd.f32 %v361_v12, %v348_v10  ;;  %v376_v17 = vpop.f32.mrf.mxu0  ;;  %v1699_v10 = vld [vmem:[#allocation11 + $0x70] sm:$0xf0] }
 0x13a   :  { %v403_v18 = vrot.slane %v402_v11, 2  ;;  %v389_v22 = vpop.f32.mrf.mxu1  ;;  %v418_v31 = vadd.f32 %v417_v20, %v416_v9  ;;  %v2215_v9 = vor.u32 %v1698_v6, %v1494_v4  ;;  %v2220_v12 = vor.u32 %v1699_v10, %v1502_v8  ;;  %v1695_v20 = vld [vmem:[#allocation11 + $0x50] sm:$0xf0]  ;;  %v1686_v4 = vld [vmem:[#allocation11 + $0x8] sm:$0xf0] }
 0x13b   :  { %v392_v25 = vsel %vm391_vm2, %v2162_v15, 0.0  ;;  %v407_v26 = vmul.f32 %v2162_v15, %v2162_v15  ;;  %v1554_v22 = vld [vmem:[#allocation11 + $0xd8] sm:$0xf]  ;;  %v1454_v6 = vld [vmem:[#allocation11 + $0x8] sm:$0xf] }
 0x13c   :  { %v404_v27 = vadd.f32 %v403_v18, %v402_v11  ;;  %v393_v28 = vrot.slane %v392_v25, 4  ;;  %v419_v40 = vrot.slane %v418_v31, 2  ;;  %v1482_v18 = vld [vmem:[#allocation11 + $0x48] sm:$0xf]  ;;  %v1687_v8 = vld [vmem:[#allocation11 + $0x10] sm:$0xf0] }
 0x13d   :  { %v409_v29 = vsel %vm391_vm2, %v407_v26, 0.0  ;;  %v1713_v26 = vld [vmem:[#allocation11 + $0xe0] sm:$0xf0]  ;;  %v1700_v10 = vld [vmem:[#allocation11 + $0x7c] sm:$0xf] }
 0x13e   :  { %v405_v30 = vrot.slane %v404_v27, 1  ;;  %v394_v32 = vadd.f32 %v393_v28, %v392_v25  ;;  %v410_v33 = vrot.slane %v409_v29, 4  ;;  %v420_v47 = vadd.f32 %v419_v40, %v418_v31  ;;  %v1696_v28 = vld [vmem:[#allocation11 + $0x58] sm:$0xf0] }
 0x13f   :  { %v350_v34 = vpop.f32.mrf.mxu2  ;;  %v2227_v25 = vor.u32 %v1695_v20, %v1482_v18  ;;  %v2229_v31 = vor.u32 %v1713_v26, %v1554_v22  ;;  %v1508_v18 = vld [vmem:[#allocation11 + $0x84] sm:$0xf0]  ;;  %v2268_v26 = vor.u32 %v1687_v8, %v1454_v6 }
 0x140   :  { %v406_v35 = vadd.f32 %v405_v30, %v404_v27  ;;  %v411_v36 = vadd.f32 %v410_v33, %v409_v29  ;;  %v363_v37 = vpop.f32.mrf.mxu3  ;;  %v395_v38 = vrot.slane %v394_v32, 2  ;;  %v421_v59 = vrot.slane %v420_v47, 1  ;;  %v1490_v27 = vld [vmem:[#allocation11 + $0x50] sm:$0xf] }
 0x141   :  { %v1542_v37 = vld [vmem:[#allocation11 + $0xc0] sm:$0xf] }
 0x142   :  { %v412_v41 = vrot.slane %v411_v36, 2  ;;  %1440 = vmatmul.msk.f32.vlgmr.msra.gmra.mxu1 %vm465_vm3, %v406_v35  ;;  %v396_v43 = vadd.f32 %v395_v38, %v394_v32  ;;  %v2231_v32 = vor.u32 %v1696_v28, %v1490_v27  ;;  %v2270_v27 = vor.u32 %v1700_v10, %v1508_v18  ;;  %v1712_v28 = vld [vmem:[#allocation11 + $0xdc] sm:$0xf]  ;;  %v1550_v10 = vld [vmem:[#allocation11 + $0xc8] sm:$0xf] }
 0x143   :  { %592 = vmatpush.msra.mxu1 %v2074_v13  ;;  %v422_v13 = vadd.f32 %v421_v59, %v420_v47  ;;  %v1532_v59 = vld [vmem:[#allocation11 + $0xb4] sm:$0xf0]  ;;  %v1711_v18 = vld [vmem:[#allocation11 + $0xd0] sm:$0xf0] }
 0x144   :  { %v397_v44 = vrot.slane %v396_v43, 1  ;;  %v413_v46 = vadd.f32 %v412_v41, %v411_v36  ;;  %v1692_v36 = vld [vmem:[#allocation11 + $0x38] sm:$0xf0] }
 0x145   :  { %593 = vmatpush.msra.mxu1 %v2077_v14  ;;  %v1530_v14 = vld [vmem:[#allocation11 + $0xa8] sm:$0xf] }
 0x146   :  { %v398_v50 = vadd.f32 %v397_v44, %v396_v43  ;;  %v414_v53 = vrot.slane %v413_v46, 1  ;;  %v1710_v44 = vld [vmem:[#allocation11 + $0xc8] sm:$0xf0] }
 0x147   :  { %594 = vmatpush.msra.mxu1 %v2079_v16  ;;  %v1707_v16 = vld [vmem:[#allocation11 + $0xb0] sm:$0xf0] }
 0x148   :  { %485 = vmatmul.f32.vlgmr.msrb.gmra.mxu3 %v398_v50  ;;  %525 = vmatmul.f32.vlgmr.msrb.gmra.mxu2 %v398_v50  ;;  %v415_v56 = vadd.f32 %v414_v53, %v413_v46  ;;  %v1478_v46 = vld [vmem:[#allocation11 + $0x38] sm:$0xf]  ;;  %v2240_v50 = vor.u32 %v1710_v44, %v1542_v37  ;;  %v1693_v53 = vld [vmem:[#allocation11 + $0x40] sm:$0xf0] }
 0x149   :  { %595 = vmatpush.msra.mxu1 %v2084_v19  ;;  %623 = vmatpush.msrb.mxu3 %v2117_v49  ;;  %v1538_v19 = vld [vmem:[#allocation11 + $0xb0] sm:$0xf]  ;;  %v1526_v49 = vld [vmem:[#allocation11 + $0x98] sm:$0xf] }
 0x14a   :  { %1441 = vmatmul.msk.f32.vlgmr.msrb.gmra.mxu1 %vm465_vm3, %v406_v35  ;;  %568 = vmatmul.f32.vlgmr.msra.gmra.mxu0 %v415_v56  ;;  %v1470_v35 = vld [vmem:[#allocation11 + $0x30] sm:$0xf] }
 0x14b   :  { %596 = vmatpush.msra.mxu1 %v2088_v21  ;;  %624 = vmatpush.msrb.mxu3 %v2123_v52  ;;  %v2194_v21 = vor.u32 %v1707_v16, %v1530_v14  ;;  %v1705_v52 = vld [vmem:[#allocation11 + $0xa0] sm:$0xf0]  ;;  %v2238_v43 = vor.u32 %v1692_v36, %v1470_v35  ;;  %v2243_v14 = vor.u32 %v1693_v53, %v1478_v46  ;;  %v1544_v53 = vld [vmem:[#allocation11 + $0xcc] sm:$0xf0] }
 0x14d   :  { %597 = vmatpush.msra.mxu1 %v2103_v39  ;;  %625 = vmatpush.msrb.mxu3 %v2129_v55  ;;  %v1708_v39 = vld [vmem:[#allocation11 + $0xb8] sm:$0xf0]  ;;  %v1506_v55 = vld [vmem:[#allocation11 + $0x78] sm:$0xf] }
 0x14f   :  { %598 = vmatpush.msra.mxu1 %v2109_v42  ;;  %626 = vmatpush.msrb.mxu3 %v2135_v58  ;;  %v2196_v42 = vor.u32 %v1708_v39, %v1538_v19  ;;  %v1514_v58 = vld [vmem:[#allocation11 + $0x80] sm:$0xf]  ;;  %v843_v19 = vunpack.c.h.b16 %v2208_v62  ;;  %v1458_v39 = vld [vmem:[#allocation11 + $0x18] sm:$0xf] }
 0x150   :  { %1442 = vmatmul.msk.f32.vlgmr.msra.gmra.mxu3 %vm465_vm3, %v422_v13 }
 0x151   :  { %599 = vmatpush.msra.mxu1 %v2112_v45  ;;  %627 = vmatpush.msrb.mxu3 %v2141_v61  ;;  %v1518_v45 = vld [vmem:[#allocation11 + $0x90] sm:$0xf]  ;;  %v1702_v61 = vld [vmem:[#allocation11 + $0x88] sm:$0xf0] }
 0x153   :  { %600 = vmatpush.msra.mxu1 %v2115_v48  ;;  %920 = vmatpush.bf16.msra.mxu3 %v2194_v21  ;;  %v1704_v48 = vld [vmem:[#allocation11 + $0x98] sm:$0xf0] }
 0x155   :  { %601 = vmatpush.msra.mxu1 %v2121_v51  ;;  %v2200_v51 = vor.u32 %v1704_v48, %v1518_v45  ;;  %v1689_v45 = vld [vmem:[#allocation11 + $0x20] sm:$0xf0]  ;;  %v1466_v48 = vld [vmem:[#allocation11 + $0x20] sm:$0xf] }
 0x157   :  { %602 = vmatpush.msra.mxu1 %v2127_v54  ;;  %v2202_v54 = vor.u32 %v1705_v52, %v1526_v49  ;;  %921 = vmatpush.bf16.msra.mxu3 %v2200_v51  ;;  %v2253_v52 = vor.u32 %v1689_v45, %v1458_v39 }
 0x158   :  { %1443 = vmatmul.msk.f32.vlgmr.msrb.gmra.mxu3 %vm465_vm3, %v422_v13 }
 0x159   :  { %603 = vmatpush.msra.mxu1 %v2133_v57  ;;  %v1701_v57 = vld [vmem:[#allocation11 + $0x80] sm:$0xf0] }
 0x15b   :  { %604 = vmatpush.msra.mxu1 %v2139_v60  ;;  %v2206_v60 = vor.u32 %v1701_v57, %v1506_v55  ;;  %v1690_v55 = vld [vmem:[#allocation11 + $0x28] sm:$0xf0]  ;;  %v1703_v57 = vld [vmem:[#allocation11 + $0x94] sm:$0xf] }
 0x15d   :  { %605 = vmatpush.msra.mxu1 %v2145_v63  ;;  %922 = vmatpush.bf16.msra.mxu3 %v2206_v60 }
 0x15f   :  { %606 = vmatpush.msra.mxu1 %v2148_v1  ;;  %v2210_v1 = vor.u32 %v1702_v61, %v1514_v58  ;;  %v876_v58 = vpack.c.b16 %v843_v19, %v843_v19  ;;  %v2255_v61 = vor.u32 %v1690_v55, %v1466_v48  ;;  %v1484_v19 = vld [vmem:[#allocation11 + $0x54] sm:$0xf0]  ;;  %v1562_v48 = vld [vmem:[#allocation11 + $0xe0] sm:$0xf]  ;;  %v1714_v55 = vld [vmem:[#allocation11 + $0xe8] sm:$0xf0] }
 0x161   :  { %607 = vmatpush.msra.mxu1 %v2152_v2  ;;  %v842_v2 = vunpack.c.l.b16 %v2208_v62  ;;  %923 = vmatpush.bf16.msra.mxu3 %v2215_v9 }
 0x162   :  { %608 = vmatmul.f32.vlgmr.msra.gmra.mxu1 %v415_v56  ;;  %v1706_v56 = vld [vmem:[#allocation11 + $0xac] sm:$0xf] }
 0x163   :  { %972 = vmatpush.bf16.msrb.mxu1 %v2196_v42  ;;  %v875_v7 = vpack.c.b16 %v842_v2, %v842_v2  ;;  %v2245_v16 = vor.u32 %v1706_v56, %v1532_v59  ;;  %v915_v2 = vsel %vm391_vm2, %v876_v58, 0  ;;  %v1694_v56 = vld [vmem:[#allocation11 + $0x4c] sm:$0xf] }
 0x164   :  { %964 = vmatpush.bf16.msra.mxu2 %v915_v2  ;;  %v2286_v58 = vor.u32 %v1694_v56, %v1484_v19 }
 0x165   :  { %v2218_v11 = vsel %vm391_vm2, %v875_v7, 0  ;;  %924 = vmatpush.bf16.msra.mxu3 %v2227_v25 }
 0x166   :  { %938 = vmatpush.bf16.msrb.mxu0 %v2218_v11 }
 0x167   :  { %973 = vmatpush.bf16.msrb.mxu1 %v2202_v54 }
 0x169   :  { %925 = vmatpush.bf16.msra.mxu3 %v2238_v43 }
 0x16a   :  { %939 = vmatpush.bf16.msrb.mxu0 %v2229_v31 }
 0x16b   :  { %974 = vmatpush.bf16.msrb.mxu1 %v2210_v1 }
 0x16d   :  { %926 = vmatpush.bf16.msra.mxu3 %v2253_v52 }
 0x16e   :  { %940 = vmatpush.bf16.msrb.mxu0 %v2240_v50 }
 0x16f   :  { %975 = vmatpush.bf16.msrb.mxu1 %v2220_v12 }
 0x172   :  { %946 = vmatpush.bf16.msra.mxu0 %v2245_v16 }
 0x173   :  { %976 = vmatpush.bf16.msrb.mxu1 %v2231_v32 }
 0x177   :  { %977 = vmatpush.bf16.msrb.mxu1 %v2243_v14 }
 0x17b   :  { %978 = vmatpush.bf16.msrb.mxu1 %v2255_v61 }
 0x17f   :  { %979 = vmatpush.bf16.msrb.mxu1 %v2268_v26 }
 0x183   :  { %1054 = vmatpush.bf16.msra.mxu1 %v915_v2  ;;  %v1472_v2 = vld [vmem:[#allocation11 + $0x3c] sm:$0xf0] }
 0x1bf   :  { %v506_v63 = vpop.f32.mrf.mxu1 }
 0x1c7   :  { %v569_v29 = vpop.f32.mrf.mxu0  ;;  %v546_v38 = vpop.f32.mrf.mxu1 }
 0x1cb   :  { %v486_v0 = vpop.f32.mrf.mxu3  ;;  %v526_v33 = vpop.f32.mrf.mxu2 }
 0x1cc   :  { %v507_v3 = vadd.f32 %v506_v63, %v486_v0  ;;  %v547_v47 = vadd.f32 %v546_v38, %v526_v33  ;;  %v1520_v63 = vld [vmem:[#allocation11 + $0x9c] sm:$0xf0] }
 0x1cd   :  { %v2261_v0 = vor.u32 %v1703_v57, %v1520_v63 }
 0x1ce   :  { %v2222_v17 = vmul.f32 0.005952381, %v507_v3  ;;  %v2257_v62 = vmul.f32 0.005952381, %v547_v47  ;;  %v1446_v3 = vld [vmem:[#allocation11] sm:$0xf] }
 0x1cf   :  { %947 = vmatpush.bf16.msra.mxu0 %v2261_v0  ;;  %v2266_v7 = vor.u32 %v1686_v4, %v1446_v3  ;;  %v1709_v47 = vld [vmem:[#allocation11 + $0xc4] sm:$0xf]  ;;  %v1691_v3 = vld [vmem:[#allocation11 + $0x34] sm:$0xf]  ;;  %v2289_v4 = vor.u32 %v1714_v55, %v1562_v48 }
 0x1d0   :  { %v636_v40 = vmul.f32 %v2222_v17, %v2222_v17  ;;  %v637_v37 = vmul.f32 %v2257_v62, %v2257_v62  ;;  %v2293_v6 = vor.u32 %v1691_v3, %v1472_v2 }
 0x1d1   :  { %927 = vmatpush.bf16.msra.mxu3 %v2266_v7 }
 0x1d3   :  { %v589_v30 = vpop.f32.mrf.mxu3  ;;  %948 = vmatpush.bf16.msra.mxu0 %v2270_v27 }
 0x1d4   :  { %v590_v34 = vadd.f32 %v589_v30, %v569_v29  ;;  %v1556_v29 = vld [vmem:[#allocation11 + $0xe4] sm:$0xf0] }
 0x1d5   :  { %v1559_v33 = vor.u32 %v1712_v28, %v1556_v29  ;;  %1010 = vmatpush.bf16.msrb.mxu3 %v2194_v21 }
 0x1d6   :  { %v634_v41 = vmul.f32 0.005952381, %v590_v34  ;;  %v737_v34 = vld [vmem:[#allocation11 + $0xf8] sm:$0xf] }
 0x1d7   :  { %v844_v35 = vunpack.c.l.b16 %v737_v34  ;;  %965 = vmatpush.bf16.msra.mxu2 %v1559_v33  ;;  %1055 = vmatpush.bf16.msra.mxu1 %v1559_v33 }
 0x1d8   :  { %v638_v13 = vsub.f32 %v634_v41, %v636_v40  ;;  %v1697_v40 = vld [vmem:[#allocation11 + $0x64] sm:$0xf]  ;;  %v1496_v41 = vld [vmem:[#allocation11 + $0x6c] sm:$0xf0] }
 0x1d9   :  { %v2279_v46 = vor.u32 %v1697_v40, %v1496_v41  ;;  %v877_v21 = vpack.c.b16 %v844_v35, %v844_v35  ;;  %1011 = vmatpush.bf16.msrb.mxu3 %v2200_v51 }
 0x1da   :  { %v2249_v49 = vadd.f32 1e-05, %v638_v13  ;;  %v1547_v13 = vor.u32 %v1709_v47, %v1544_v53  ;;  %v998_v47 = vld [vmem:[#allocation5] sm:$0xff] }
 0x1db   :  { %v629_v20 = vpop.f32.mrf.mxu3  ;;  %v2283_v45 = vsel %vm391_vm2, %v877_v21, 0  ;;  %949 = vmatpush.bf16.msra.mxu0 %v2279_v46  ;;  %1000 = vst [vmem:[#allocation1] ss:$2 sm:$0xff] %v998_v47 }
 0x1dc   :  { %1753 = vrsqrt.f32 %v2249_v49  ;;  %966 = vmatpush.bf16.msra.mxu2 %v1547_v13  ;;  %vm648_vm5 = vweird.f32 %v2249_v49  ;;  %1056 = vmatpush.bf16.msra.mxu1 %v1547_v13 }
 0x1dd   :  { %1012 = vmatpush.bf16.msrb.mxu3 %v2206_v60  ;;  %v1688_v60 = vld [vmem:[#allocation11 + $0x1c] sm:$0xf] }
 0x1df   :  { %v609_v22 = vpop.f32.mrf.mxu1  ;;  %950 = vmatpush.bf16.msra.mxu0 %v2286_v58 }
 0x1e0   :  { %v630_v30 = vadd.f32 %v629_v20, %v609_v22  ;;  %990 = vmatpush.bf16.msrb.mxu2 %v2283_v45  ;;  %v1551_v20 = vor.u32 %v1711_v18, %v1550_v10 }
 0x1e1   :  { %1013 = vmatpush.bf16.msrb.mxu3 %v2215_v9  ;;  %v1448_v9 = vld [vmem:[#allocation11 + $0xc] sm:$0xf0] }
 0x1e2   :  { %v1754_v36 = vpop.eup %1753  ;;  %v635_v38 = vmul.f32 0.005952381, %v630_v30  ;;  %v1460_v30 = vld [vmem:[#allocation11 + $0x24] sm:$0xf0] }
 0x1e3   :  { %v643_v44 = vmul.f32 %v1754_v36, %v2249_v49  ;;  %vm649_vm4 = vweird.f32 %v1754_v36  ;;  %951 = vmatpush.bf16.msra.mxu0 %v2293_v6  ;;  %v2299_v34 = vor.u32 %v1688_v60, %v1460_v30  ;;  %v1001_v10 = vld.sshfl [vmem:[#allocation1] sm:$0xff pattern:$0x75316420] }
 0x1e4   :  { %v639_v59 = vsub.f32 %v635_v38, %v637_v37  ;;  %vm650_vm6 = vmor %vm648_vm5, %vm649_vm4  ;;  %991 = vmatpush.bf16.msrb.mxu2 %v2289_v4  ;;  %v1735_v60 = vld [vmem:[#allocation13 + $0xa0] sm:$0xff] }
 0x1e5   :  { %v644_v39 = vmul.f32 %v1754_v36, %v643_v44  ;;  %1014 = vmatpush.bf16.msrb.mxu3 %v2227_v25 }
 0x1e6   :  { %v641_v57 = vadd.f32 1e-05, %v639_v59 }
 0x1e7   :  { %v645_v63 = vmul.f32 0.5, %v644_v39  ;;  %952 = vmatpush.bf16.msra.mxu0 %v2299_v34 }
 0x1e8   :  { %1755 = vrsqrt.f32 %v641_v57  ;;  %992 = vmatpush.bf16.msrb.mxu2 %v1551_v20  ;;  %vm658_vm8 = vweird.f32 %v641_v57 }
 0x1e9   :  { %v646_v51 = vsub.f32 1.5, %v645_v63  ;;  %1015 = vmatpush.bf16.msrb.mxu3 %v2238_v43 }
 0x1eb   :  { %v647_v8 = vmul.f32 %v1754_v36, %v646_v51 }
 0x1ed   :  { %v651_v22 = vsel %vm650_vm6, %v1754_v36, %v647_v8  ;;  %v1685_v36 = vld [vmem:[#allocation11 + $0x4] sm:$0xf]  ;;  %1016 = vmatpush.bf16.msrb.mxu3 %v2253_v52 }
 0x1ee   :  { %v1756_v28 = vpop.eup %1755  ;;  %v664_v29 = vrot.slane %v651_v22, 7  ;;  %v1451_v40 = vor.u32 %v1685_v36, %v1448_v9  ;;  %v1005_v22 = vpack.c.bf16 %v1001_v10, %v1001_v10 }
 0x1ef   :  { %v653_v33 = vmul.f32 %v1756_v28, %v641_v57  ;;  %vm659_vm7 = vweird.f32 %v1756_v28 }
 0x1f0   :  { %v668_v49 = vmul.f32 %v664_v29, %v2092_v23  ;;  %953 = vmatpush.bf16.msra.mxu0 %v1451_v40  ;;  %vm660_vm9 = vmor %vm658_vm8, %vm659_vm7  ;;  %v1724_v29 = vld [vmem:[#allocation13 + $0x48] sm:$0xff] }
 0x1f1   :  { %v654_v35 = vmul.f32 %v1756_v28, %v653_v33  ;;  %1017 = vmatpush.bf16.msrb.mxu3 %v2266_v7 }
 0x1f2   :  { %v672_v37 = vrot.slane %v668_v49, 1  ;;  %v686_v21 = vperm.slane %v668_v49, 1  ;;  %v1734_v49 = vld [vmem:[#allocation13 + $0x98] sm:$0xff] }
 0x1f3   :  { %v655_v38 = vmul.f32 0.5, %v654_v35 }
 0x1f4   :  { %v676_v41 = vmul.f32 %v672_v37, %v2222_v17  ;;  %v688_v17 = vmul.f32 %v686_v21, %v2162_v15  ;;  %v1733_v37 = vld [vmem:[#allocation13 + $0x90] sm:$0xff] }
 0x1f5   :  { %v656_v44 = vsub.f32 1.5, %v655_v38 }
 0x1f6   :  { %v680_v53 = vrot.slane %v676_v41, 6 }
 0x1f7   :  { %v657_v56 = vmul.f32 %v1756_v28, %v656_v44  ;;  %v1731_v44 = vld [vmem:[#allocation13 + $0x80] sm:$0xff] }
 0x1f8   :  { %v684_v25 = vsub.f32 %v2092_v23, %v680_v53 }
 0x1f9   :  { %v661_v59 = vsel %vm660_vm9, %v1756_v28, %v657_v56  ;;  %v1088_v56 = vperm.slane %v2092_v23, 4 }
 0x1fa   :  { %v665_v13 = vrot.slane %v661_v59, 7  ;;  %v690_v19 = vperm.slane %v684_v25, 2 }
 0x1fc   :  { %v669_v39 = vmul.f32 %v665_v13, %v2094_v24  ;;  %v692_v43 = vadd.f32 %v690_v19, %v688_v17 }
 0x1fe   :  { %v673_v48 = vrot.slane %v669_v39, 1  ;;  %v694_v55 = vmax.f32 %v692_v43, 0.0  ;;  %v687_v3 = vperm.slane %v669_v39, 1  ;;  %v1089_v43 = vperm.slane %v2094_v24, 4 }
 0x200   :  { %v677_v63 = vmul.f32 %v673_v48, %v2257_v62  ;;  %v738_v57 = vpack.c.bf16 %v694_v55, %v694_v55  ;;  %v689_v15 = vmul.f32 %v687_v3, %v2157_v5  ;;  %v1002_v62 = vld.sshfl [vmem:[#allocation1 + $0x8] sm:$0xff pattern:$0x75316420]  ;;  %v1722_v5 = vld [vmem:[#allocation13 + $0x38] sm:$0xff] }
 0x202   :  { %928 = vmatmul.bf16.vlgmr.msra.gmra.mxu3 %v738_v57  ;;  %980 = vmatmul.bf16.vlgmr.msrb.gmra.mxu1 %v738_v57  ;;  %v681_v2 = vrot.slane %v677_v63, 6 }
 0x203   :  { %1080 = vmatpush.bf16.msra.mxu3 %v2283_v45  ;;  %v1006_v45 = vpack.c.bf16 %v1002_v62, %v1002_v62  ;;  %1279 = vmatpush.bf16.msrb.mxu1 %v1722_v5 }
 0x204   :  { %v685_v52 = vsub.f32 %v2094_v24, %v681_v2 }
 0x206   :  { %v691_v51 = vperm.slane %v685_v52, 2 }
 0x207   :  { %1081 = vmatpush.bf16.msra.mxu3 %v2289_v4  ;;  %v1725_v4 = vld [vmem:[#allocation13 + $0x50] sm:$0xff] }
 0x208   :  { %v693_v8 = vadd.f32 %v691_v51, %v689_v15  ;;  %v152_v15 = vld [vmem:[#allocation14 + $0x10] sm:$0x1f] }
 0x20a   :  { %v695_v7 = vmax.f32 %v693_v8, 0.0  ;;  %v1090_v8 = vperm.slane %v152_v15, 4 }
 0x20b   :  { %1082 = vmatpush.bf16.msra.mxu3 %v1551_v20 }
 0x20c   :  { %v739_v18 = vpack.c.bf16 %v695_v7, %v695_v7 }
 0x20e   :  { %1564 = vmatmul.msk.bf16.vlgmr.msrb.gmra.mxu0 %vm465_vm3, %v739_v18  ;;  %1565 = vmatmul.msk.bf16.vlgmr.msra.gmra.mxu2 %vm465_vm3, %v739_v18 }
 0x20f   :  { %1036 = vmatpush.bf16.msra.mxu2 %v2245_v16  ;;  %1028 = vmatpush.bf16.msrb.mxu0 %v2218_v11  ;;  %v1729_v11 = vld [vmem:[#allocation13 + $0x70] sm:$0xff] }
 0x212   :  { %1018 = vmatmul.bf16.vlgmr.msrb.gmra.mxu3 %v1005_v22  ;;  %1568 = vmatmul.msk.bf16.vlgmr.msra.gmra.mxu1 %vm465_vm3, %v1006_v45 }
 0x213   :  { %1037 = vmatpush.bf16.msra.mxu2 %v2261_v0  ;;  %1029 = vmatpush.bf16.msrb.mxu0 %v2229_v31  ;;  %v1719_v31 = vld [vmem:[#allocation13 + $0x20] sm:$0xff]  ;;  %v1717_v0 = vld [vmem:[#allocation13 + $0x10] sm:$0xff] }
 0x214   :  { %1308 = vmatpush.bf16.msrb.mxu3 %v1735_v60 }
 0x217   :  { %1038 = vmatpush.bf16.msra.mxu2 %v2270_v27  ;;  %1030 = vmatpush.bf16.msrb.mxu0 %v2240_v50  ;;  %v1718_v50 = vld [vmem:[#allocation13 + $0x18] sm:$0xff] }
 0x218   :  { %1309 = vmatpush.bf16.msrb.mxu3 %v1734_v49 }
 0x21b   :  { %1039 = vmatpush.bf16.msra.mxu2 %v2279_v46  ;;  %v1716_v46 = vld [vmem:[#allocation13 + $0x8] sm:$0xff] }
 0x21c   :  { %1310 = vmatpush.bf16.msrb.mxu3 %v1733_v37 }
 0x21e   :  { %954 = vmatmul.bf16.vlgmr.msra.gmra.mxu0 %v738_v57  ;;  %1566 = vmatmul.msk.bf16.vlgmr.msrb.gmra.mxu2 %vm465_vm3, %v739_v18 }
 0x21f   :  { %1040 = vmatpush.bf16.msra.mxu2 %v2286_v58  ;;  %1062 = vmatpush.bf16.msra.mxu0 %v2196_v42  ;;  %v1721_v42 = vld [vmem:[#allocation13 + $0x30] sm:$0xff] }
 0x220   :  { %1280 = vmatpush.bf16.msrb.mxu1 %v1721_v42 }
 0x222   :  { %1569 = vmatmul.msk.bf16.vlgmr.msra.gmra.mxu3 %vm465_vm3, %v1006_v45 }
 0x223   :  { %1041 = vmatpush.bf16.msra.mxu2 %v2293_v6  ;;  %1063 = vmatpush.bf16.msra.mxu0 %v2202_v54  ;;  %v1730_v54 = vld [vmem:[#allocation13 + $0x78] sm:$0xff]  ;;  %v1715_v6 = vld [vmem:[#allocation13] sm:$0xff] }
 0x227   :  { %1042 = vmatpush.bf16.msra.mxu2 %v2299_v34  ;;  %1064 = vmatpush.bf16.msra.mxu0 %v2210_v1  ;;  %v1720_v1 = vld [vmem:[#allocation13 + $0x28] sm:$0xff]  ;;  %v1723_v34 = vld [vmem:[#allocation13 + $0x40] sm:$0xff] }
 0x228   :  { %1281 = vmatpush.bf16.msrb.mxu1 %v1720_v1 }
 0x22b   :  { %1043 = vmatpush.bf16.msra.mxu2 %v1451_v40  ;;  %1065 = vmatpush.bf16.msra.mxu0 %v2220_v12  ;;  %v1732_v40 = vld [vmem:[#allocation13 + $0x88] sm:$0xff] }
 0x22c   :  { %1282 = vmatpush.bf16.msrb.mxu1 %v1719_v31  ;;  %1311 = vmatpush.bf16.msrb.mxu3 %v1732_v40 }
 0x22e   :  { %1567 = vmatmul.msk.bf16.vlgmr.msrb.gmra.mxu0 %vm465_vm3, %v1006_v45  ;;  %1044 = vmatmul.bf16.vlgmr.msra.gmra.mxu2 %v1005_v22 }
 0x22f   :  { %1066 = vmatpush.bf16.msra.mxu0 %v2231_v32  ;;  %1292 = vmatpush.bf16.msrb.mxu2 %v1730_v54  ;;  %v1728_v32 = vld [vmem:[#allocation13 + $0x68] sm:$0xff] }
 0x230   :  { %1283 = vmatpush.bf16.msrb.mxu1 %v1718_v50  ;;  %1312 = vmatpush.bf16.msrb.mxu3 %v1731_v44 }
 0x233   :  { %1067 = vmatpush.bf16.msra.mxu0 %v2243_v14  ;;  %1293 = vmatpush.bf16.msrb.mxu2 %v1729_v11  ;;  %v1727_v14 = vld [vmem:[#allocation13 + $0x60] sm:$0xff]  ;;  %v1757_v11 = vld [vmem:[#allocation14] sm:$0x1f] }
 0x234   :  { %1284 = vmatpush.bf16.msrb.mxu1 %v1717_v0  ;;  %v1148_v31 = vperm.slane %v1757_v11, 3 }
 0x237   :  { %1068 = vmatpush.bf16.msra.mxu0 %v2255_v61  ;;  %1294 = vmatpush.bf16.msrb.mxu2 %v1728_v32 }
 0x238   :  { %1285 = vmatpush.bf16.msrb.mxu1 %v1716_v46 }
 0x23b   :  { %1069 = vmatpush.bf16.msra.mxu0 %v2268_v26  ;;  %1295 = vmatpush.bf16.msrb.mxu2 %v1727_v14  ;;  %v1726_v26 = vld [vmem:[#allocation13 + $0x58] sm:$0xff] }
 0x23c   :  { %1286 = vmatpush.bf16.msrb.mxu1 %v1715_v6 }
 0x23e   :  { %1070 = vmatmul.bf16.vlgmr.msra.gmra.mxu0 %v1005_v22 }
 0x23f   :  { %1296 = vmatpush.bf16.msrb.mxu2 %v1726_v26 }
 0x243   :  { %1297 = vmatpush.bf16.msrb.mxu2 %v1725_v4 }
 0x247   :  { %1298 = vmatpush.bf16.msrb.mxu2 %v1724_v29 }
 0x24b   :  { %1299 = vmatpush.bf16.msrb.mxu2 %v1723_v34 }
 0x27f   :  { %v2340_v12 = vpop.f32.mrf.mxu1 }
 0x285   :  { %v929_v16 = vpop.f32.mrf.mxu3 }
 0x287   :  { %v983_v61 = vpop.f32.mrf.mxu1 }
 0x28b   :  { %v942_v27 = vpop.f32.mrf.mxu0 }
 0x28c   :  { %v943_v17 = vadd.f32 %v942_v27, %v929_v16 }
 0x28d   :  { %v931_v58 = vpop.f32.mrf.mxu3 }
 0x28e   :  { %v1655_v55 = vpack.c.bf16 %v943_v17, %v943_v17 }
 0x28f   :  { %v1058_v28 = vpop.f32.mrf.mxu1 }
 0x291   :  { %v968_v20 = vpop.f32.mrf.mxu2 }
 0x293   :  { %v944_v30 = vpop.f32.mrf.mxu0 }
 0x295   :  { %v1019_v33 = vpop.f32.mrf.mxu3 }
 0x297   :  { %v1060_v36 = vpop.f32.mrf.mxu1 }
 0x299   :  { %v970_v35 = vpop.f32.mrf.mxu2 }
 0x29b   :  { %v955_v9 = vpop.f32.mrf.mxu0 }
 0x29c   :  { %v969_v3 = vadd.f32 %v968_v20, %v955_v9 }
 0x29d   :  { %v1021_v38 = vpop.f32.mrf.mxu3 }
 0x29e   :  { %v1658_v23 = vpack.c.bf16 %v969_v3, %v969_v3 }
 0x2a1   :  { %v994_v41 = vpop.f32.mrf.mxu2 }
 0x2a2   :  { %v995_v62 = vadd.f32 %v994_v41, %v2340_v12 }
 0x2a3   :  { %v957_v47 = vpop.f32.mrf.mxu0 }
 0x2a5   :  { %v1084_v53 = vpop.f32.mrf.mxu3 }
 0x2a9   :  { %v996_v21 = vpop.f32.mrf.mxu2 }
 0x2ab   :  { %v1032_v25 = vpop.f32.mrf.mxu0 }
 0x2ac   :  { %v1033_v59 = vadd.f32 %v1032_v25, %v1019_v33 }
 0x2ad   :  { %v1086_v13 = vpop.f32.mrf.mxu3 }
 0x2ae   :  { %v1091_v19 = vsub.f32 %v1033_v59, %v1088_v56 }
 0x2b0   :  { %v1094_v39 = vand.u32 2147483647, %v1091_v19 }
 0x2b1   :  { %v1045_v48 = vpop.f32.mrf.mxu2 }
 0x2b2   :  { %vm1097_vm10 = vcmp.lt.f32.partialorder %v1094_v39, 0.5  ;;  %v1059_v63 = vadd.f32 %v1058_v28, %v1045_v48 }
 0x2b3   :  { %vm1654_vm11 = vmpackc.low %vm1097_vm10, %vm1097_vm10  ;;  %v1034_v57 = vpop.f32.mrf.mxu0 }
 0x2b4   :  { %v1092_v2 = vsub.f32 %v1059_v63, %v1089_v43  ;;  %1656 = vmatmul.msk.bf16.vlgmr.msrb.gmra.mxu1 %vm1654_vm11, %v1655_v55 }
 0x2b6   :  { %v1095_v52 = vand.u32 2147483647, %v1092_v2 }
 0x2b8   :  { %vm1098_vm12 = vcmp.lt.f32.partialorder %v1095_v52, 0.5 }
 0x2b9   :  { %vm1657_vm13 = vmpackc.low %vm1098_vm12, %vm1098_vm12  ;;  %v1047_v51 = vpop.f32.mrf.mxu2 }
 0x2ba   :  { %1659 = vmatmul.msk.bf16.vlgmr.msrb.gmra.mxu2 %vm1657_vm13, %v1658_v23 }
 0x2bb   :  { %v1071_v7 = vpop.f32.mrf.mxu0 }
 0x2bc   :  { %v1085_v10 = vadd.f32 %v1084_v53, %v1071_v7 }
 0x2be   :  { %v1093_v24 = vsub.f32 %v1085_v10, %v1090_v8 }
 0x2c0   :  { %v1096_v18 = vand.u32 2147483647, %v1093_v24 }
 0x2c2   :  { %vm1099_vm14 = vcmp.lt.f32.partialorder %v1096_v18, 0.5 }
 0x2c3   :  { %v1102_v22 = vsel %vm1099_vm14, %v995_v62, 0.0  ;;  %v1073_v45 = vpop.f32.mrf.mxu0 }
 0x2c4   :  { %v1105_v5 = vpack.c.bf16 %v1102_v22, %v1102_v22 }
 0x2c6   :  { %1660 = vmatmul.msk.bf16.vlgmr.msrb.gmra.mxu3 %vm1275_vm15, %v1105_v5 }
 0x331   :  { %v1288_v42 = vpop.f32.mrf.mxu1 }
 0x332   :  { %v1289_v50 = vadd.f32 %v1288_v42, %v1148_v31 }
 0x339   :  { %v1290_v54 = vpop.f32.mrf.mxu1 }
 0x33d   :  { %v1301_v1 = vpop.f32.mrf.mxu2 }
 0x33e   :  { %v1302_v12 = vadd.f32 %v1301_v1, %v1289_v50 }
 0x345   :  { %v1303_v32 = vpop.f32.mrf.mxu2 }
 0x349   :  { %v1314_v14 = vpop.f32.mrf.mxu3 }
 0x34a   :  { %v1315_v16 = vadd.f32 %v1314_v14, %v1302_v12 }
 0x34c   :  { %1318 = vst [vmem:[#allocation16] sm:$0xf] %v1315_v16 }
 0x34d   :  { %1329 = dma.vmem_to_hbm [thread:$0]  %s1325_s7, 64, %s1327_s25, [#allocation4]  }
 0x351   :  { %v1316_v61 = vpop.f32.mrf.mxu3 }
 0x352   :  { %1984 = dma.done.wait [#allocation4], 64  }
 0x353   :  { %1985 = vsyncadd [#allocation4], 4294967232 }
 0x354   :  { %1334 = vsyncpa [#allocation3], 1 }
 0x355   :  { %1335 = vsyncpa [#allocation6], 1 }
 0x356   :  { %1336 = vsyncpa [#allocation9], 1 }
 0x357   :  { %1337 = vsyncpa [#allocation12], 1 }
 0x358   :  { %1338 = vsyncpa [#allocation15], 1 }
 0x359   :  { %1339 = vsyncpa [#allocation4], 1 }

</bundles_post_ra>
